<compile_context>
chip_gen: v6e
topology: v6e:2x2x1
jax: 0.10.0
libtpu: 0.0.40
codegen_flags: <defaults>
</compile_context>

<pallas_src>
import dataclasses
import math

import jax
import jax.numpy as jnp
from jax.experimental import pallas as pl
from jax.experimental.pallas import tpu as pltpu


# ----------------------------------------------------------------------------
# Kernel
# ----------------------------------------------------------------------------
def ffn_kernel(x_ref, w1_ref, b1_ref, w2_ref, b2_ref, o_ref, acc_ref):
    kff = pl.program_id(1)

    # fc1 slab: (tm, dm) @ (dm, tff) -> f32 on the MXU; bias + ReLU on the VPU.
    h = jnp.dot(x_ref[...], w1_ref[...], preferred_element_type=jnp.float32)
    h = jnp.maximum(h + b1_ref[...], 0.0)
    # Dropout: eval-mode identity.
    # TODO(synk): training-mode dropout would need pltpu.prng_seed +
    # pltpu.prng_random_bits keyed on (row tile, ff slab).

    # fc2 slab: (tm, tff) @ (tff, dm), accumulated in the f32 VMEM scratch.
    partial = jnp.dot(h.astype(w2_ref.dtype), w2_ref[...],
                      preferred_element_type=jnp.float32)

    @pl.when(kff == 0)
    def _():
        acc_ref[...] = partial            # direct assign: no zero-fill pass

    @pl.when(kff > 0)
    def _():
        acc_ref[...] += partial

    @pl.when(kff == pl.num_programs(1) - 1)
    def _():
        o_ref[...] = (acc_ref[...] + b2_ref[...]).astype(o_ref.dtype)


# ----------------------------------------------------------------------------
# Configuration (per TPU generation)
# ----------------------------------------------------------------------------
def _round_up(n, m):
    return ((n + m - 1) // m) * m


@dataclasses.dataclass(frozen=True)
class FFNConfig:
    d_model: int
    d_ff: int
    dm_pad: int
    dff_pad: int
    tm: int
    tff: int
    tm_align: int
    vmem_limit_bytes: int
    compute_dtype: object


def make_ffn_config(d_model, d_ff, compute_dtype=jnp.bfloat16,
                    out_dtype=jnp.float32):
    kind = ""
    try:
        kind = jax.devices()[0].device_kind.lower()
    except Exception:
        pass

    if ("v5 lite" in kind) or ("v5e" in kind) or ("v5lite" in kind):
        # v5e: 128 MiB VMEM, 197 TF/s, ~0.82 TB/s -> tm=256 hits the roofline
        # crossover with bf16; larger tff cuts acc read-modify-write passes.
        tm, tff, tm_align = 256, 1024, 128
        vmem_limit = 100 * 1024 * 1024
    elif "v6" in kind:
        # v6e: 128 MiB VMEM, needs ~680 flop/B -> large row tiles.
        tm, tff, tm_align = 1024, 1024, 256
        vmem_limit = 100 * 1024 * 1024
    elif ("v7" in kind) or ("7x" in kind):
        # v7x: only 64 MiB VMEM per TC but only needs ~311 flop/B.
        tm, tff, tm_align = 512, 512, 256
        vmem_limit = 56 * 1024 * 1024
    else:
        # Unknown / v4 / v5p / interpret: conservative defaults.
        tm, tff, tm_align = 512, 512, 256
        vmem_limit = 48 * 1024 * 1024

    dm_pad = _round_up(d_model, 128)
    tff_eff = min(tff, _round_up(d_ff, 128))

    in_sz = jnp.dtype(compute_dtype).itemsize
    out_sz = jnp.dtype(out_dtype).itemsize
    budget = vmem_limit - 4 * 1024 * 1024  # leave scheduler headroom

    def footprint(tm_, tff_):
        return (2 * tm_ * dm_pad * in_sz          # x tile (double-buffered)
                + 2 * dm_pad * tff_ * in_sz       # W1 slab
                + 2 * tff_ * dm_pad * in_sz       # W2 slab
                + 2 * 8 * tff_ * 4                # b1 slab (f32, sublane-pad)
                + 2 * 8 * dm_pad * 4              # b2 (f32)
                + 2 * tm_ * dm_pad * out_sz       # out tile
                + tm_ * dm_pad * 4)               # f32 accumulator scratch

    while footprint(tm, tff_eff) > budget and tff_eff > 256:
        tff_eff = max(256, _round_up(tff_eff // 2, 128))
    while footprint(tm, tff_eff) > budget and tm > 256:
        tm //= 2

    dff_pad = _round_up(_round_up(d_ff, 128), tff_eff)
    return FFNConfig(d_model=d_model, d_ff=d_ff, dm_pad=dm_pad,
                     dff_pad=dff_pad, tm=tm, tff=tff_eff, tm_align=tm_align,
                     vmem_limit_bytes=vmem_limit, compute_dtype=compute_dtype)


# ----------------------------------------------------------------------------
# One-time parameter preparation (pad + cast; keep out of the per-call path)
# ----------------------------------------------------------------------------
def prepare_ffn_params(w1_t, b1, w2_t, b2, cfg):
    """w1_t: (d_model, d_ff), w2_t: (d_ff, d_model).  Pads + casts once."""
    d_model, d_ff = cfg.d_model, cfg.d_ff
    w1p = jnp.pad(w1_t, ((0, cfg.dm_pad - d_model),
                         (0, cfg.dff_pad - d_ff))).astype(cfg.compute_dtype)
    w2p = jnp.pad(w2_t, ((0, cfg.dff_pad - d_ff),
                         (0, cfg.dm_pad - d_model))).astype(cfg.compute_dtype)
    b1p = jnp.pad(b1.astype(jnp.float32),
                  (0, cfg.dff_pad - d_ff)).reshape(1, cfg.dff_pad)
    b2p = jnp.pad(b2.astype(jnp.float32),
                  (0, cfg.dm_pad - d_model)).reshape(1, cfg.dm_pad)
    return w1p, b1p, w2p, b2p


# ----------------------------------------------------------------------------
# Forward pass
# ----------------------------------------------------------------------------
def feed_forward_network(x, params, cfg):
    """x: (B, S, d_model) -> (B, S, d_model)."""
    B, S, d_model = x.shape
    assert d_model == cfg.d_model
    w1p, b1p, w2p, b2p = params
    M = B * S

    # Row tile: align to the MXU-friendly multiple for mid/large M, keep tiny
    # inputs small (8-aligned).  Pad rows up to a multiple of the tile.
    if M >= cfg.tm_align:
        tm_eff = min(cfg.tm, _round_up(M, cfg.tm_align))
    else:
        tm_eff = _round_up(M, 8)
    M_pad = _round_up(M, tm_eff)

    x2 = x.reshape(M, d_model).astype(cfg.compute_dtype)
    x2 = jnp.pad(x2, ((0, M_pad - M), (0, cfg.dm_pad - d_model)))

    grid = (M_pad // tm_eff, cfg.dff_pad // cfg.tff)

    # Cost estimate: weights are re-streamed once per row tile.
    n_row_tiles = M_pad // tm_eff
    flops = 4 * M_pad * cfg.dm_pad * cfg.dff_pad  # two GEMMs, 2*M*N*K each
    bytes_accessed = int(
        x2.size * x2.dtype.itemsize
        + n_row_tiles * ((w1p.size + w2p.size) * w1p.dtype.itemsize
                         + b1p.size * b1p.dtype.itemsize
                         + b2p.size * b2p.dtype.itemsize)
        + M_pad * cfg.dm_pad * jnp.dtype(x.dtype).itemsize)

    out2 = pl.pallas_call(
        ffn_kernel,
        out_shape=jax.ShapeDtypeStruct((M_pad, cfg.dm_pad), x.dtype),
        grid_spec=pltpu.PrefetchScalarGridSpec(
            num_scalar_prefetch=0,
            grid=grid,
            in_specs=[
                pl.BlockSpec((tm_eff, cfg.dm_pad), lambda i, k: (i, 0)),   # x
                pl.BlockSpec((cfg.dm_pad, cfg.tff), lambda i, k: (0, k)),  # W1^T
                pl.BlockSpec((1, cfg.tff), lambda i, k: (0, k)),           # b1
                pl.BlockSpec((cfg.tff, cfg.dm_pad), lambda i, k: (k, 0)),  # W2^T
                pl.BlockSpec((1, cfg.dm_pad), lambda i, k: (0, 0)),        # b2
            ],
            out_specs=pl.BlockSpec((tm_eff, cfg.dm_pad), lambda i, k: (i, 0)),
            scratch_shapes=[pltpu.VMEM((tm_eff, cfg.dm_pad), jnp.float32)],
        ),
        compiler_params=pltpu.CompilerParams(
            dimension_semantics=("parallel", "arbitrary"),
            vmem_limit_bytes=cfg.vmem_limit_bytes,
        ),
        cost_estimate=pl.CostEstimate(
            flops=flops, transcendentals=0, bytes_accessed=bytes_accessed),
    )(x2, w1p, b1p, w2p, b2p)

    return out2[:M, :d_model].reshape(B, S, d_model)


# ----------------------------------------------------------------------------
# Init + reference
# ----------------------------------------------------------------------------
def init_linear_params(key, d_in, d_out, dtype=jnp.float32):
    """Deterministic init mimicking nn.Linear defaults (uniform +/- 1/sqrt(d_in))."""
    kw, kb = jax.random.split(key)
    limit = 1.0 / math.sqrt(d_in)
    # PyTorch stores weight as (d_out, d_in); we store the transpose (d_in, d_out).
    w_t = jax.random.uniform(kw, (d_in, d_out), dtype, -limit, limit)
    b = jax.random.uniform(kb, (d_out,), dtype, -limit, limit)
    return w_t, b


def ffn_reference(x, w1_t, b1, w2_t, b2, compute_dtype=jnp.bfloat16):
    """Pure-JAX reference emulating the kernel's bf16-operand / f32-acc math."""
    h = jnp.dot(x.astype(compute_dtype), w1_t.astype(compute_dtype),
                preferred_element_type=jnp.float32) + b1.astype(jnp.float32)
    h = jnp.maximum(h, 0.0)
    y = jnp.dot(h.astype(compute_dtype), w2_t.astype(compute_dtype),
                preferred_element_type=jnp.float32) + b2.astype(jnp.float32)
    return y.astype(x.dtype)


if __name__ == "__main__":
    d_model, d_ff, dropout = 32, 64, 0.1   # dropout is inert in eval mode
    batch, seq = 2, 8

    key = jax.random.PRNGKey(0)
    kx, k1, k2 = jax.random.split(key, 3)

    x = jax.random.normal(kx, (batch, seq, d_model), jnp.float32)
    w1_t, b1 = init_linear_params(k1, d_model, d_ff)
    w2_t, b2 = init_linear_params(k2, d_ff, d_model)

    cfg = make_ffn_config(d_model, d_ff)
    params = prepare_ffn_params(w1_t, b1, w2_t, b2, cfg)   # one-time prep

    out = feed_forward_network(x, params, cfg)
    out = jax.block_until_ready(out)

    ref = ffn_reference(x, w1_t, b1, w2_t, b2)
    assert out.shape == (batch, seq, d_model)
    max_err = float(jnp.max(jnp.abs(out - ref)))
    assert jnp.allclose(out, ref, atol=2e-2, rtol=2e-2), max_err

    print("KERNEL_OK")
</pallas_src>

<mosaic_0001>
module attributes {stable_mosaic.version = 11 : i64} {
  func.func @ffn_kernel(%arg0: i32, %arg1: i32, %arg2: memref<16x128xbf16, #tpu.memory_space<vmem>>, %arg3: memref<128x128xbf16, #tpu.memory_space<vmem>>, %arg4: memref<1x128xf32, #tpu.memory_space<vmem>>, %arg5: memref<128x128xbf16, #tpu.memory_space<vmem>>, %arg6: memref<1x128xf32, #tpu.memory_space<vmem>>, %arg7: memref<16x128xf32, #tpu.memory_space<vmem>>, %arg8: memref<16x128xf32, #tpu.memory_space<vmem>>) attributes {dimension_semantics = [#tpu.dimension_semantics<parallel>, #tpu.dimension_semantics<arbitrary>], iteration_bounds = array<i64: 1, 1>, scalar_prefetch = 0 : i64, scratch_operands = 1 : i64, tpu.core_type = #tpu.core_type<tc>, window_params = [{transform_indices = @transform_0, window_bounds = array<i64: 16, 128>}, {transform_indices = @transform_1, window_bounds = array<i64: 128, 128>}, {transform_indices = @transform_2, window_bounds = array<i64: 1, 128>}, {transform_indices = @transform_3, window_bounds = array<i64: 128, 128>}, {pipeline_mode = #tpu.pipeline_mode<synchronous>, transform_indices = @transform_4, window_bounds = array<i64: 1, 128>}, {transform_indices = @transform_5, window_bounds = array<i64: 16, 128>}]} {
    %c0 = arith.constant 0 : index
    %c0_0 = arith.constant 0 : index
    %0 = vector.load %arg2[%c0, %c0_0] : memref<16x128xbf16, #tpu.memory_space<vmem>>, vector<16x128xbf16>
    %c0_1 = arith.constant 0 : index
    %c0_2 = arith.constant 0 : index
    %1 = vector.load %arg3[%c0_1, %c0_2] : memref<128x128xbf16, #tpu.memory_space<vmem>>, vector<128x128xbf16>
    %cst = arith.constant dense<0.000000e+00> : vector<16x128xf32>
    %2 = tpu.matmul %0, %1, %cst {dimension_numbers = #tpu.dot_dimension_numbers<[1], [0], [0], [1], [0, 0, 1, 1], [], []>} : vector<16x128xbf16>, vector<128x128xbf16>, vector<16x128xf32> -> vector<16x128xf32>
    %c0_3 = arith.constant 0 : index
    %c0_4 = arith.constant 0 : index
    %3 = vector.load %arg4[%c0_3, %c0_4] : memref<1x128xf32, #tpu.memory_space<vmem>>, vector<1x128xf32>
    %4 = vector.broadcast %3 : vector<1x128xf32> to vector<16x128xf32>
    %5 = arith.addf %2, %4 : vector<16x128xf32>
    %cst_5 = arith.constant 0.000000e+00 : f32
    %6 = vector.broadcast %cst_5 : f32 to vector<16x128xf32>
    %7 = arith.maximumf %5, %6 : vector<16x128xf32>
    %8 = arith.truncf %7 : vector<16x128xf32> to vector<16x128xbf16>
    %c0_6 = arith.constant 0 : index
    %c0_7 = arith.constant 0 : index
    %9 = vector.load %arg5[%c0_6, %c0_7] : memref<128x128xbf16, #tpu.memory_space<vmem>>, vector<128x128xbf16>
    %cst_8 = arith.constant dense<0.000000e+00> : vector<16x128xf32>
    %10 = tpu.matmul %8, %9, %cst_8 {dimension_numbers = #tpu.dot_dimension_numbers<[1], [0], [0], [1], [0, 0, 1, 1], [], []>} : vector<16x128xbf16>, vector<128x128xbf16>, vector<16x128xf32> -> vector<16x128xf32>
    %c0_i32 = arith.constant 0 : i32
    %11 = arith.cmpi eq, %arg1, %c0_i32 : i32
    %12 = arith.extui %11 : i1 to i32
    %c0_i32_9 = arith.constant 0 : i32
    %13 = arith.cmpi ne, %12, %c0_i32_9 : i32
    scf.if %13 {
      %c0_14 = arith.constant 0 : index
      %c0_15 = arith.constant 0 : index
      %20 = vector.load %arg8[%c0_14, %c0_15] : memref<16x128xf32, #tpu.memory_space<vmem>>, vector<16x128xf32>
      tpu.vector_store %arg8[%c0_14, %c0_15], %10 {strides = array<i32>} : memref<16x128xf32, #tpu.memory_space<vmem>>, vector<16x128xf32>,
    } else {
    }
    %c0_i32_10 = arith.constant 0 : i32
    %14 = arith.cmpi sgt, %arg1, %c0_i32_10 : i32
    %15 = arith.extui %14 : i1 to i32
    %c0_i32_11 = arith.constant 0 : i32
    %16 = arith.cmpi ne, %15, %c0_i32_11 : i32
    scf.if %16 {
      %c0_14 = arith.constant 0 : index
      %c0_15 = arith.constant 0 : index
      %20 = vector.load %arg8[%c0_14, %c0_15] : memref<16x128xf32, #tpu.memory_space<vmem>>, vector<16x128xf32>
      %21 = arith.addf %20, %10 : vector<16x128xf32>
      %c0_16 = arith.constant 0 : index
      %c0_17 = arith.constant 0 : index
      %22 = vector.load %arg8[%c0_16, %c0_17] : memref<16x128xf32, #tpu.memory_space<vmem>>, vector<16x128xf32>
      tpu.vector_store %arg8[%c0_16, %c0_17], %21 {strides = array<i32>} : memref<16x128xf32, #tpu.memory_space<vmem>>, vector<16x128xf32>,
    } else {
    }
    %c0_i32_12 = arith.constant 0 : i32
    %17 = arith.cmpi eq, %arg1, %c0_i32_12 : i32
    %18 = arith.extui %17 : i1 to i32
    %c0_i32_13 = arith.constant 0 : i32
    %19 = arith.cmpi ne, %18, %c0_i32_13 : i32
    scf.if %19 {
      %c0_14 = arith.constant 0 : index
      %c0_15 = arith.constant 0 : index
      %20 = vector.load %arg8[%c0_14, %c0_15] : memref<16x128xf32, #tpu.memory_space<vmem>>, vector<16x128xf32>
      %c0_16 = arith.constant 0 : index
      %c0_17 = arith.constant 0 : index
      %21 = vector.load %arg6[%c0_16, %c0_17] : memref<1x128xf32, #tpu.memory_space<vmem>>, vector<1x128xf32>
      %22 = vector.broadcast %21 : vector<1x128xf32> to vector<16x128xf32>
      %23 = arith.addf %20, %22 : vector<16x128xf32>
      %c0_18 = arith.constant 0 : index
      %c0_19 = arith.constant 0 : index
      %24 = vector.load %arg7[%c0_18, %c0_19] : memref<16x128xf32, #tpu.memory_space<vmem>>, vector<16x128xf32>
      tpu.vector_store %arg7[%c0_18, %c0_19], %23 {strides = array<i32>} : memref<16x128xf32, #tpu.memory_space<vmem>>, vector<16x128xf32>,
    } else {
    }
    return
  }
  func.func @transform_0(%arg0: i32, %arg1: i32) -> (i32, i32) {
    %c0_i32 = arith.constant 0 : i32
    %c0_i32_0 = arith.constant 0 : i32
    return %arg0, %c0_i32 : i32, i32
  }
  func.func @transform_1(%arg0: i32, %arg1: i32) -> (i32, i32) {
    %c0_i32 = arith.constant 0 : i32
    %c0_i32_0 = arith.constant 0 : i32
    return %c0_i32, %arg1 : i32, i32
  }
  func.func @transform_2(%arg0: i32, %arg1: i32) -> (i32, i32) {
    %c0_i32 = arith.constant 0 : i32
    %c0_i32_0 = arith.constant 0 : i32
    return %c0_i32, %arg1 : i32, i32
  }
  func.func @transform_3(%arg0: i32, %arg1: i32) -> (i32, i32) {
    %c0_i32 = arith.constant 0 : i32
    %c0_i32_0 = arith.constant 0 : i32
    return %arg1, %c0_i32 : i32, i32
  }
  func.func @transform_4(%arg0: i32, %arg1: i32) -> (i32, i32) {
    %c0_i32 = arith.constant 0 : i32
    %c0_i32_0 = arith.constant 0 : i32
    %c0_i32_1 = arith.constant 0 : i32
    return %c0_i32, %c0_i32_0 : i32, i32
  }
  func.func @transform_5(%arg0: i32, %arg1: i32) -> (i32, i32) {
    %c0_i32 = arith.constant 0 : i32
    %c0_i32_0 = arith.constant 0 : i32
    return %arg0, %c0_i32 : i32, i32
  }
}

</mosaic_0001>

<bundles_post_ra>
// kernel: tpu_custom_call.1
= control target key start
LH: loop header
LB: loop body
LE: loop exit
PB: predicated region body
PF: predicated region fallthrough
CT: control target
= control target key end

     0   :  { %10 = vsyncpa [#allocation4], 0  ;;  %s589_s0 = inlined_call_operand.hbm [shape: bf16[16,128], index: 0, kind: input, shape index: {}]   ;;  %s590_s1 = inlined_call_operand.hbm [shape: bf16[128,128], index: 1, kind: input, shape index: {}]   ;;  %s591_s2 = inlined_call_operand.vmem [shape: f32[1,128], index: 2, kind: input, shape index: {}]   ;;  %s592_s3 = inlined_call_operand.hbm [shape: bf16[128,128], index: 3, kind: input, shape index: {}]   ;;  %s593_s4 = inlined_call_operand.vmem [shape: f32[1,128], index: 4, kind: input, shape index: {}]   ;;  %s594_s5 = inlined_call_operand.hbm [shape: f32[16,128], index: 5, kind: output, shape index: {}]  }
   0x1   :  { %11 = vsyncpa [#allocation7], 0 }
   0x2   :  { %12 = vsyncpa [#allocation5], 0  ;;  %s531_s18 = smov [#allocation6]   ;;  %s532_s20 = smov [#allocation3]  }
   0x3   :  { %s30_s19 = sshll.u32 %s531_s18, 4  ;;  %s18_s21 = sshll.u32 %s532_s20, 4  ;;  %s31_s19 = int_to_ptr.vmem [resolvable:$true] %s30_s19  ;;  %s19_s21 = int_to_ptr.vmem [resolvable:$true] %s18_s21 }
   0x4   :  { %s453_s22 = scalar_lea.vmem %s31_s19, 1024  ;;  %p458_p1 = scmp.lt.s32.totalorder %s31_s19, %s31_s19 }
   0x5   :  { %p454_p0 = scmp.ne.s32.totalorder %s31_s19, %s453_s22  ;;  %p459_p2 = scmp.lt.s32.totalorder %s453_s22, %s453_s22 }
   0x7   :  { %p460_p3 = por %p459_p2, %p458_p1 }
   0x9   :  { %p461_p4 = pnand %p460_p3, %p454_p0 }
   0xb   :  { %464 = shalt.err (!%p461_p4)
}
   0xc   :  { %s533_s23 = smov 64   ;;  %s534_s24 = smov 4  }
   0xd   :  { %36 = dma.hbm_to_vmem [thread:$0]  %s590_s1, 1024, %s31_s19, [#allocation7], %s533_s23, %s533_s23, %s534_s24  }
   0xe   :  { %s473_s27 = scalar_lea.vmem %s19_s21, 128  ;;  %p478_p6 = scmp.lt.s32.totalorder %s19_s21, %s19_s21 }
   0xf   :  { %p474_p5 = scmp.ne.s32.totalorder %s19_s21, %s473_s27  ;;  %p479_p7 = scmp.lt.s32.totalorder %s473_s27, %s473_s27 }
  0x11   :  { %p480_p8 = por %p479_p7, %p478_p6 }
  0x13   :  { %p481_p9 = pnand %p480_p8, %p474_p5 }
  0x15   :  { %484 = shalt.err (!%p481_p9)
}
  0x16   :  { %24 = dma.hbm_to_vmem [thread:$0]  %s589_s0, 128, %s19_s21, [#allocation4], %s533_s23, %s533_s23, %s534_s24  }
  0x17   :  { %s535_s30 = smov [#allocation8]  }
  0x18   :  { %s44_s6 = sshll.u32 %s535_s30, 4  ;;  %s45_s6 = int_to_ptr.vmem [resolvable:$true] %s44_s6 }
  0x19   :  { %s493_s7 = scalar_lea.vmem %s45_s6, 1024  ;;  %p498_p11 = scmp.lt.s32.totalorder %s45_s6, %s45_s6 }
  0x1a   :  { %p494_p10 = scmp.ne.s32.totalorder %s45_s6, %s493_s7  ;;  %p499_p12 = scmp.lt.s32.totalorder %s493_s7, %s493_s7 }
  0x1c   :  { %p500_p13 = por %p499_p12, %p498_p11 }
  0x1e   :  { %p501_p0 = pnand %p500_p13, %p494_p10 }
  0x20   :  { %504 = shalt.err (!%p501_p0)
}
  0x21   :  { %50 = dma.hbm_to_vmem [thread:$0]  %s592_s3, 1024, %s45_s6, [#allocation7], %s533_s23, %s533_s23, %s534_s24  }
  0x22   :  { %525 = dma.done.wait [#allocation4], 128  }
  0x23   :  { %526 = vsyncadd [#allocation4], 4294967168 }
  0x24   :  { %527 = dma.done.wait [#allocation7], 2048  }
  0x25   :  { %528 = vsyncadd [#allocation7], 4294965248  ;;  %v536_v0 = vmov 0.0   ;;  %vm537_vm0 = vmmov 0   ;;  %v428_v1 = vld [vmem:[#allocation6 + $0x38] sm:$0xff]   ;;  %v429_v2 = vld [vmem:[#allocation6 + $0x30] sm:$0xff]  }
  0x26   :  { %378 = vmatprep.subr.bf16.mxu0 %v536_v0  ;;  %394 = vmatprep.mubr.msk.bf16.mxu0 %vm537_vm0, %v536_v0  ;;  %v430_v3 = vld [vmem:[#allocation6 + $0x28] sm:$0xff]   ;;  %v437_v4 = vld [vmem:[#allocation8 + $0x38] sm:$0xff]   ;;  %v431_v5 = vld [vmem:[#allocation6 + $0x20] sm:$0xff]   ;;  %s538_s11 = smov [#allocation9]  }
  0x27   :  { %398 = vmatprep.subr.bf16.mxu1 %v536_v0  ;;  %414 = vmatprep.mubr.msk.bf16.mxu1 %vm537_vm0, %v536_v0  ;;  %v438_v6 = vld [vmem:[#allocation8 + $0x30] sm:$0xff]   ;;  %v432_v7 = vld [vmem:[#allocation6 + $0x18] sm:$0xff]   ;;  %v439_v8 = vld [vmem:[#allocation8 + $0x28] sm:$0xff]   ;;  %s328_s12 = sshll.u32 %s538_s11, 4  ;;  %s329_s12 = int_to_ptr.vmem [resolvable:$true] %s328_s12 }
  0x28   :  { %379 = vmatpush3.bf16.msra.mxu0 %v428_v1  ;;  %399 = vmatpush3.bf16.msra.mxu1 %v437_v4  ;;  %v433_v9 = vld [vmem:[#allocation6 + $0x10] sm:$0xff]   ;;  %v440_v10 = vld [vmem:[#allocation8 + $0x20] sm:$0xff]   ;;  %v434_v11 = vld [vmem:[#allocation6 + $0x8] sm:$0xff]   ;;  %p510_p2 = scmp.lt.s32.totalorder %s329_s12, %s329_s12 }
  0x29   :  { %380 = vmatprep.subr.bf16.mxu0 %v536_v0  ;;  %400 = vmatprep.subr.bf16.mxu1 %v536_v0  ;;  %v441_v12 = vld [vmem:[#allocation8 + $0x18] sm:$0xff]   ;;  %v435_v13 = vld [vmem:[#allocation6] sm:$0xff]   ;;  %v442_v15 = vld [vmem:[#allocation8 + $0x10] sm:$0xff]  }
  0x2a   :  { %v436_v14 = vld [vmem:[#allocation3] sm:$0xff]   ;;  %v443_v16 = vld [vmem:[#allocation8 + $0x8] sm:$0xff]   ;;  %v444_v17 = vld [vmem:[#allocation8] sm:$0xff]  }
  0x2b   :  { %v341_v18 = vld [vmem:[%s591_s2] ss:$0 sm:$0xff]  ;;  %s505_s2 = scalar_lea.vmem %s329_s12, 256 }
  0x2c   :  { %381 = vmatpush3.bf16.msra.mxu0 %v429_v2  ;;  %401 = vmatpush3.bf16.msra.mxu1 %v438_v6  ;;  %v359_v28 = vld [vmem:[%s593_s4] ss:$0 sm:$0xff]  ;;  %p506_p1 = scmp.ne.s32.totalorder %s329_s12, %s505_s2  ;;  %p511_p3 = scmp.lt.s32.totalorder %s505_s2, %s505_s2 }
  0x2d   :  { %382 = vmatprep.subr.bf16.mxu0 %v536_v0  ;;  %402 = vmatprep.subr.bf16.mxu1 %v536_v0 }
  0x2e   :  { %p512_p4 = por %p511_p3, %p510_p2 }
  0x30   :  { %383 = vmatpush3.bf16.msra.mxu0 %v430_v3  ;;  %403 = vmatpush3.bf16.msra.mxu1 %v439_v8  ;;  %p513_p5 = pnand %p512_p4, %p506_p1 }
  0x31   :  { %384 = vmatprep.subr.bf16.mxu0 %v536_v0  ;;  %404 = vmatprep.subr.bf16.mxu1 %v536_v0 }
  0x34   :  { %385 = vmatpush3.bf16.msra.mxu0 %v431_v5  ;;  %405 = vmatpush3.bf16.msra.mxu1 %v440_v10 }
  0x35   :  { %386 = vmatprep.subr.bf16.mxu0 %v536_v0  ;;  %406 = vmatprep.subr.bf16.mxu1 %v536_v0 }
  0x38   :  { %387 = vmatpush3.bf16.msra.mxu0 %v432_v7  ;;  %407 = vmatpush3.bf16.msra.mxu1 %v441_v12 }
  0x39   :  { %388 = vmatprep.subr.bf16.mxu0 %v536_v0  ;;  %408 = vmatprep.subr.bf16.mxu1 %v536_v0 }
  0x3c   :  { %389 = vmatpush3.bf16.msra.mxu0 %v433_v9  ;;  %409 = vmatpush3.bf16.msra.mxu1 %v442_v15 }
  0x3d   :  { %390 = vmatprep.subr.bf16.mxu0 %v536_v0  ;;  %410 = vmatprep.subr.bf16.mxu1 %v536_v0 }
  0x40   :  { %391 = vmatpush3.bf16.msra.mxu0 %v434_v11  ;;  %411 = vmatpush3.bf16.msra.mxu1 %v443_v16 }
  0x41   :  { %392 = vmatprep.subr.bf16.mxu0 %v536_v0  ;;  %412 = vmatprep.subr.bf16.mxu1 %v536_v0 }
  0x44   :  { %393 = vmatpush3.bf16.msra.mxu0 %v435_v13  ;;  %413 = vmatpush3.bf16.msra.mxu1 %v444_v17 }
  0x47   :  { %395 = vmatmul.mubr.bf16.vlgmr.msra.gmra.mxu0 %v436_v14 }
 0x107   :  { %v176_v19 = vpop.f32.mrf.mxu0 }
 0x108   :  { %v177_v21 = vadd.f32 %v341_v18, %v176_v19 }
 0x109   :  { %v396_v20 = vpop.f32.mrf.mxu0 }
 0x10a   :  { %v183_v25 = vmax.f32 %v177_v21, 0.0 }
 0x10b   :  { %v179_v22 = vpop.f32.mrf.mxu0 }
 0x10c   :  { %v180_v23 = vadd.f32 %v341_v18, %v179_v22 }
 0x10d   :  { %v397_v24 = vpop.f32.mrf.mxu0 }
 0x10e   :  { %v184_v26 = vmax.f32 %v180_v23, 0.0 }
 0x110   :  { %v185_v27 = vpack.c.bf16 %v184_v26, %v183_v25 }
 0x112   :  { %415 = vmatmul.mubr.bf16.vlgmr.msra.gmra.mxu1 %v185_v27 }
 0x1d2   :  { %v284_v29 = vpop.f32.mrf.mxu1 }
 0x1d3   :  { %v319_v30 = vadd.f32 %v359_v28, %v284_v29 }
 0x1d4   :  { %v416_v31 = vpop.f32.mrf.mxu1 }
 0x1d5   :  { %321 = vst [vmem:[#allocation9] sm:$0xff] %v319_v30 }
 0x1d6   :  { %v287_v32 = vpop.f32.mrf.mxu1 }
 0x1d7   :  { %v320_v33 = vadd.f32 %v359_v28, %v287_v32 }
 0x1d8   :  { %v417_v34 = vpop.f32.mrf.mxu1 }
 0x1d9   :  { %322 = vst [vmem:[#allocation9 + $0x8] sm:$0xff] %v320_v33 }
 0x1da   :  { %516 = shalt.err (!%p513_p5)
}
 0x1db   :  { %s539_s13 = smov 128   ;;  %s540_s4 = smov 8  }
 0x1dc   :  { %334 = dma.vmem_to_hbm [thread:$0]  %s329_s12, 256, %s594_s5, [#allocation5], %s539_s13, %s539_s13, %s540_s4  }
 0x1dd   :  { %529 = dma.done.wait [#allocation5], 256  }
 0x1de   :  { %530 = vsyncadd [#allocation5], 4294967040 }
 0x1df   :  { %338 = vsyncpa [#allocation4], 1 }
 0x1e0   :  { %339 = vsyncpa [#allocation7], 1 }
 0x1e1   :  { %340 = vsyncpa [#allocation5], 1 }

</bundles_post_ra>
